<compile_context>
chip_gen: v7x
topology: tpu7x:2x2x1
jax: 0.10.0
libtpu: 0.0.40
codegen_flags: <defaults>
</compile_context>

<pallas_src>
import functools
import math

import jax
import jax.numpy as jnp
import numpy as np
from jax.experimental import pallas as pl
from jax.experimental.pallas import tpu as pltpu

_LANE = 128
_SUBLANE = 8
_DEFAULT_MAX_TILE_BYTES = 4 * 1024 * 1024    # per-input tile cap (lane-padded bytes)
_DEFAULT_MIN_PALLAS_BYTES = 256 * 1024       # below this, fused XLA is already at roofline


def _cdiv(a, b):
    return -(-a // b)


def _round_up(x, m):
    return _cdiv(x, m) * m


def _round_down(x, m):
    return (x // m) * m


def _vmem_capacity_bytes():
    """Physical VMEM of the local TPU generation (conservative fallback = v7x)."""
    try:
        info = pltpu.get_tpu_info()
        cap = getattr(info, "vmem_capacity_bytes", None)
        if cap:
            return int(cap)
    except Exception:
        pass
    return 64 * 1024 * 1024  # v7x has the smallest physical VMEM (64 MiB)


def _num_tensorcores():
    """Best-effort TensorCore count (v7x has 2); safe fallback of 1."""
    try:
        info = pltpu.get_tpu_info()
        for attr in ("num_tensorcores", "tensorcore_count", "num_cores", "core_count"):
            v = getattr(info, attr, None)
            if isinstance(v, int) and v > 0:
                return v
    except Exception:
        pass
    return 1


def _vmem_limit(needed_bytes, vmem_cap):
    # Raise the scoped-VMEM limit above generation defaults when needed, while
    # leaving headroom for Mosaic internal scratch under physical VMEM (binding
    # constraint is v7x's 64 MiB -> limit stays <= 48 MiB there).
    return int(min(int(vmem_cap * 0.75), max(needed_bytes + (8 << 20), 16 << 20)))


# ---------------------------------------------------------------------------
# Kernels
# ---------------------------------------------------------------------------
def _reduce_kernel(out_ref, gt_ref, loss_ref, acc_ref, *,
                   squared: bool, d_total: int, tile_d: int, mask_cols: bool):
    """(tile_r, tile_d) block -> accumulate per-row sum of |diff| (or diff^2)."""
    k = pl.program_id(1)

    @pl.when(k == 0)
    def _init():
        acc_ref[...] = jnp.zeros_like(acc_ref)

    diff = out_ref[...].astype(jnp.float32) - gt_ref[...].astype(jnp.float32)
    e = diff * diff if squared else jnp.abs(diff)
    if mask_cols:  # only on the D-tiled path when D % tile_d != 0
        col = jax.lax.broadcasted_iota(jnp.int32, e.shape, 1) + k * tile_d
        e = jnp.where(col < d_total, e, 0.0)
    acc_ref[...] += jnp.sum(e, axis=-1, keepdims=True)

    @pl.when(k == pl.num_programs(1) - 1)
    def _store():
        loss_ref[...] = acc_ref[...].astype(loss_ref.dtype)


def _elemwise_kernel(out_ref, gt_ref, loss_ref, *, squared: bool):
    """Elementwise |diff| (or diff^2), no reduction (1-D input path)."""
    diff = out_ref[...].astype(jnp.float32) - gt_ref[...].astype(jnp.float32)
    e = diff * diff if squared else jnp.abs(diff)
    loss_ref[...] = e.astype(loss_ref.dtype)


# ---------------------------------------------------------------------------
# Wrappers
# ---------------------------------------------------------------------------
def _root_loss_reduce(out2, gt2, squared, max_tile_bytes):
    """(R, D) inputs -> (R,) per-row reduced loss."""
    R, D = out2.shape
    itemsize = jnp.dtype(out2.dtype).itemsize
    vmem_cap = _vmem_capacity_bytes()

    d_pad = _round_up(D, _LANE)                 # lane-padded width in VMEM
    row_in_bytes = d_pad * itemsize
    # 2 inputs x 2 pipeline buffers must fit comfortably in VMEM.
    per_tile_budget = min(max_tile_bytes, int(vmem_cap * 0.6) // 4)

    if row_in_bytes * _SUBLANE <= per_tile_budget:
        # Full rows fit: no reduction-axis tiling.
        tile_d = D
        tile_r = max(_SUBLANE, _round_down(per_tile_budget // row_in_bytes, _SUBLANE))
        # Core-aware step-count heuristic: only on multi-TC parts (v7x) ask for
        # >= 2 'parallel' row steps per core when R allows; v5e/v6e keep the
        # full budget-sized tile (no pointless per-step overhead).
        nc = _num_tensorcores()
        if nc > 1:
            min_steps = 2 * nc
            if _cdiv(R, _SUBLANE) >= min_steps:
                tile_r = min(tile_r,
                             max(_SUBLANE, _round_up(_cdiv(R, min_steps), _SUBLANE)))
        tile_r = min(tile_r, _round_up(R, _SUBLANE))
    else:
        # Very large rows: tile the reduction (D) axis, accumulate across k.
        tile_r = _SUBLANE
        tile_d = max(_LANE, _round_down(per_tile_budget // (tile_r * itemsize), _LANE))
        tile_d = min(tile_d, d_pad)

    num_r = _cdiv(R, tile_r)
    num_k = _cdiv(D, tile_d)
    mask_cols = (D % tile_d) != 0   # False on the full-row path (tile_d == D)

    # VMEM accounting with lane padding included.
    in_tile_bytes = tile_r * _round_up(tile_d, _LANE) * itemsize
    out_tile_bytes = tile_r * _LANE * itemsize          # (tile_r, 1) block, lane-padded
    acc_bytes = tile_r * _LANE * 4
    needed = 4 * in_tile_bytes + 2 * out_tile_bytes + acc_bytes

    cost = pl.CostEstimate(
        flops=3 * R * D,
        transcendentals=0,
        bytes_accessed=2 * R * D * itemsize + R * itemsize,
    )

    loss2 = pl.pallas_call(
        functools.partial(_reduce_kernel, squared=squared, d_total=D,
                          tile_d=tile_d, mask_cols=mask_cols),
        out_shape=jax.ShapeDtypeStruct((R, 1), out2.dtype),
        grid_spec=pltpu.PrefetchScalarGridSpec(
            num_scalar_prefetch=0,
            grid=(num_r, num_k),
            in_specs=[pl.BlockSpec((tile_r, tile_d), lambda i, k: (i, k)),
                      pl.BlockSpec((tile_r, tile_d), lambda i, k: (i, k))],
            out_specs=pl.BlockSpec((tile_r, 1), lambda i, k: (i, 0)),
            scratch_shapes=[pltpu.VMEM((tile_r, 1), jnp.float32)],
        ),
        compiler_params=pltpu.CompilerParams(
            dimension_semantics=("parallel", "arbitrary"),
            vmem_limit_bytes=_vmem_limit(needed, vmem_cap),
        ),
        cost_estimate=cost,
    )(out2, gt2)

    return loss2.reshape((R,))


def _root_loss_1d(out, gt, squared, max_tile_bytes):
    """1-D inputs -> elementwise loss (no reduction); direct cdiv tiling on (n,)."""
    n = out.shape[0]
    itemsize = jnp.dtype(out.dtype).itemsize
    vmem_cap = _vmem_capacity_bytes()

    # 2 inputs + 1 output, each double-buffered -> 6 live tiles.
    per_tile_budget = min(max_tile_bytes, int(vmem_cap * 0.6) // 6)
    vreg_elems = _SUBLANE * _LANE
    tile_elems = max(vreg_elems, _round_down(per_tile_budget // itemsize, vreg_elems))
    tile_elems = min(tile_elems, _round_up(n, vreg_elems))

    num_blocks = _cdiv(n, tile_elems)
    needed = 6 * tile_elems * itemsize

    cost = pl.CostEstimate(
        flops=2 * n,
        transcendentals=0,
        bytes_accessed=3 * n * itemsize,
    )

    return pl.pallas_call(
        functools.partial(_elemwise_kernel, squared=squared),
        out_shape=jax.ShapeDtypeStruct((n,), out.dtype),
        grid_spec=pltpu.PrefetchScalarGridSpec(
            num_scalar_prefetch=0,
            grid=(num_blocks,),
            in_specs=[pl.BlockSpec((tile_elems,), lambda i: (i,)),
                      pl.BlockSpec((tile_elems,), lambda i: (i,))],
            out_specs=pl.BlockSpec((tile_elems,), lambda i: (i,)),
        ),
        compiler_params=pltpu.CompilerParams(
            dimension_semantics=("parallel",),
            vmem_limit_bytes=_vmem_limit(needed, vmem_cap),
        ),
        cost_estimate=cost,
    )(out, gt)


def _root_loss_ref(out, gt, squared):
    """Plain fused-XLA fallback for tiny inputs (pallas_call overhead dominates)."""
    d = out.astype(jnp.float32) - gt.astype(jnp.float32)
    e = d * d if squared else jnp.abs(d)
    if e.ndim > 1:
        e = jnp.sum(e, axis=-1)
    return e.astype(out.dtype)


def root_loss(out, gt, loss: str = 'l1', *,
              min_pallas_bytes: int = _DEFAULT_MIN_PALLAS_BYTES,
              max_tile_bytes: int = _DEFAULT_MAX_TILE_BYTES):
    """Pallas implementation of RootLoss.forward(out, gt)."""
    assert out.shape == gt.shape, "out and gt must have the same shape"
    if loss not in ('l1', 'l2'):
        raise ValueError(f"unsupported loss: {loss}")
    squared = (loss == 'l2')

    itemsize = jnp.dtype(out.dtype).itemsize
    total_in_bytes = 2 * int(math.prod(out.shape)) * itemsize
    if out.ndim == 0 or int(math.prod(out.shape)) == 0 or total_in_bytes < min_pallas_bytes:
        return _root_loss_ref(out, gt, squared)

    if out.ndim == 1:
        return _root_loss_1d(out, gt, squared, max_tile_bytes)

    lead_shape = out.shape[:-1]
    D = out.shape[-1]
    R = int(math.prod(lead_shape))
    loss_flat = _root_loss_reduce(out.reshape(R, D), gt.reshape(R, D),
                                  squared, max_tile_bytes)
    return loss_flat.reshape(lead_shape)


if __name__ == "__main__":
    key = jax.random.PRNGKey(0)
    k1, k2 = jax.random.split(key)

    # ---- tiny root-position-like shape (batch=2, joints=8, dim=32):
    # below the pallas threshold -> fused-XLA fallback.
    out_s = jax.random.normal(k1, (2, 8, 32), dtype=jnp.float32)
    gt_s = jax.random.normal(k2, (2, 8, 32), dtype=jnp.float32)
    r = root_loss(out_s, gt_s, loss='l1')
    jax.block_until_ready(r)
    ref = jnp.sum(jnp.abs(out_s - gt_s), axis=-1)
    assert r.shape == ref.shape == (2, 8)
    np.testing.assert_allclose(np.asarray(r), np.asarray(ref), rtol=1e-6, atol=1e-6)

    # same tiny shape forced through the Pallas kernel (D < 128, lane-padded path).
    rp = root_loss(out_s, gt_s, loss='l1', min_pallas_bytes=0)
    jax.block_until_ready(rp)
    np.testing.assert_allclose(np.asarray(rp), np.asarray(ref), rtol=1e-6, atol=1e-6)

    # ---- Pallas path, L1 + L2; row count not a multiple of the tile (partial last
    # block handled by cdiv grid + OOB, no input padding).
    out_m = jax.random.normal(k1, (3, 100, 384), dtype=jnp.float32)
    gt_m = jax.random.normal(k2, (3, 100, 384), dtype=jnp.float32)
    r1 = root_loss(out_m, gt_m, loss='l1')
    jax.block_until_ready(r1)
    np.testing.assert_allclose(np.asarray(r1),
                               np.asarray(jnp.sum(jnp.abs(out_m - gt_m), axis=-1)),
                               rtol=1e-5, atol=1e-5)
    r2 = root_loss(out_m, gt_m, loss='l2')
    jax.block_until_ready(r2)
    np.testing.assert_allclose(np.asarray(r2),
                               np.asarray(jnp.sum(jnp.square(out_m - gt_m), axis=-1)),
                               rtol=1e-4, atol=1e-4)

    # ---- D-tiled (reduction-axis) path with a masked tail (D % tile_d != 0),
    # forced via a small per-tile byte budget.
    out_k = jax.random.normal(k1, (64, 5000), dtype=jnp.float32)
    gt_k = jax.random.normal(k2, (64, 5000), dtype=jnp.float32)
    rk = root_loss(out_k, gt_k, loss='l1', min_pallas_bytes=0, max_tile_bytes=128 * 1024)
    jax.block_until_ready(rk)
    np.testing.assert_allclose(np.asarray(rk),
                               np.asarray(jnp.sum(jnp.abs(out_k - gt_k), axis=-1)),
                               rtol=1e-4, atol=1e-4)

    # ---- 1-D (no-reduction) Pallas path, length not a multiple of the block.
    o1 = jax.random.normal(k1, (70000,), dtype=jnp.float32)
    g1 = jax.random.normal(k2, (70000,), dtype=jnp.float32)
    r1d = root_loss(o1, g1, loss='l1')
    jax.block_until_ready(r1d)
    np.testing.assert_allclose(np.asarray(r1d), np.asarray(jnp.abs(o1 - g1)),
                               rtol=1e-6, atol=1e-6)

    # tiny 1-D -> fallback path.
    o1s = jax.random.normal(k1, (37,), dtype=jnp.float32)
    g1s = jax.random.normal(k2, (37,), dtype=jnp.float32)
    r1s = root_loss(o1s, g1s, loss='l1')
    jax.block_until_ready(r1s)
    np.testing.assert_allclose(np.asarray(r1s), np.asarray(jnp.abs(o1s - g1s)),
                               rtol=1e-6, atol=1e-6)

    print("KERNEL_OK")
</pallas_src>

<mosaic_0001>
module attributes {stable_mosaic.version = 11 : i64} {
  func.func @_reduce_kernel(%arg0: i32, %arg1: i32, %arg2: memref<16x32xf32, #tpu.memory_space<vmem>>, %arg3: memref<16x32xf32, #tpu.memory_space<vmem>>, %arg4: memref<16x1xf32, #tpu.memory_space<vmem>>, %arg5: memref<16x1xf32, #tpu.memory_space<vmem>>) attributes {dimension_semantics = [#tpu.dimension_semantics<parallel>, #tpu.dimension_semantics<arbitrary>], iteration_bounds = array<i64: 1, 1>, scalar_prefetch = 0 : i64, scratch_operands = 1 : i64, tpu.core_type = #tpu.core_type<tc>, window_params = [{transform_indices = @transform_0, window_bounds = array<i64: 16, 32>}, {transform_indices = @transform_1, window_bounds = array<i64: 16, 32>}, {transform_indices = @transform_2, window_bounds = array<i64: 16, 1>}]} {
    %c0_i32 = arith.constant 0 : i32
    %0 = arith.cmpi eq, %arg1, %c0_i32 : i32
    %1 = arith.extui %0 : i1 to i32
    %c0_i32_0 = arith.constant 0 : i32
    %2 = arith.cmpi ne, %1, %c0_i32_0 : i32
    scf.if %2 {
      %cst_10 = arith.constant 0.000000e+00 : f32
      %15 = vector.broadcast %cst_10 : f32 to vector<16x1xf32>
      %c0_11 = arith.constant 0 : index
      %c0_12 = arith.constant 0 : index
      %16 = vector.load %arg5[%c0_11, %c0_12] : memref<16x1xf32, #tpu.memory_space<vmem>>, vector<16x1xf32>
      tpu.vector_store %arg5[%c0_11, %c0_12], %15 {strides = array<i32>} : memref<16x1xf32, #tpu.memory_space<vmem>>, vector<16x1xf32>,
    } else {
    }
    %c0 = arith.constant 0 : index
    %c0_1 = arith.constant 0 : index
    %3 = vector.load %arg2[%c0, %c0_1] : memref<16x32xf32, #tpu.memory_space<vmem>>, vector<16x32xf32>
    %c0_2 = arith.constant 0 : index
    %c0_3 = arith.constant 0 : index
    %4 = vector.load %arg3[%c0_2, %c0_3] : memref<16x32xf32, #tpu.memory_space<vmem>>, vector<16x32xf32>
    %5 = arith.subf %3, %4 : vector<16x32xf32>
    %6 = math.absf %5 : vector<16x32xf32>
    %c0_4 = arith.constant 0 : index
    %c0_5 = arith.constant 0 : index
    %7 = vector.load %arg5[%c0_4, %c0_5] : memref<16x1xf32, #tpu.memory_space<vmem>>, vector<16x1xf32>
    %cst = arith.constant dense<0.000000e+00> : vector<16xf32>
    %8 = vector.multi_reduction <add>, %6, %cst [1] : vector<16x32xf32> to vector<16xf32>
    %9 = vector.shape_cast %8 : vector<16xf32> to vector<16x1xf32>
    %10 = arith.addf %7, %9 : vector<16x1xf32>
    %c0_6 = arith.constant 0 : index
    %c0_7 = arith.constant 0 : index
    %11 = vector.load %arg5[%c0_6, %c0_7] : memref<16x1xf32, #tpu.memory_space<vmem>>, vector<16x1xf32>
    tpu.vector_store %arg5[%c0_6, %c0_7], %10 {strides = array<i32>} : memref<16x1xf32, #tpu.memory_space<vmem>>, vector<16x1xf32>,
    %c0_i32_8 = arith.constant 0 : i32
    %12 = arith.cmpi eq, %arg1, %c0_i32_8 : i32
    %13 = arith.extui %12 : i1 to i32
    %c0_i32_9 = arith.constant 0 : i32
    %14 = arith.cmpi ne, %13, %c0_i32_9 : i32
    scf.if %14 {
      %c0_10 = arith.constant 0 : index
      %c0_11 = arith.constant 0 : index
      %15 = vector.load %arg5[%c0_10, %c0_11] : memref<16x1xf32, #tpu.memory_space<vmem>>, vector<16x1xf32>
      %c0_12 = arith.constant 0 : index
      %c0_13 = arith.constant 0 : index
      %16 = vector.load %arg4[%c0_12, %c0_13] : memref<16x1xf32, #tpu.memory_space<vmem>>, vector<16x1xf32>
      tpu.vector_store %arg4[%c0_12, %c0_13], %15 {strides = array<i32>} : memref<16x1xf32, #tpu.memory_space<vmem>>, vector<16x1xf32>,
    } else {
    }
    return
  }
  func.func @transform_0(%arg0: i32, %arg1: i32) -> (i32, i32) {
    %c0_i32 = arith.constant 0 : i32
    return %arg0, %arg1 : i32, i32
  }
  func.func @transform_1(%arg0: i32, %arg1: i32) -> (i32, i32) {
    %c0_i32 = arith.constant 0 : i32
    return %arg0, %arg1 : i32, i32
  }
  func.func @transform_2(%arg0: i32, %arg1: i32) -> (i32, i32) {
    %c0_i32 = arith.constant 0 : i32
    %c0_i32_0 = arith.constant 0 : i32
    return %arg0, %c0_i32 : i32, i32
  }
}

</mosaic_0001>

<bundles_post_ra>
// kernel: tpu_custom_call.1
= control target key start
LH: loop header
LB: loop body
LE: loop exit
PB: predicated region body
PF: predicated region fallthrough
CT: control target
= control target key end

     0   :  { %7 = vsyncpa [#allocation4], 0  ;;  %s190_s0 = inlined_call_operand.hbm [shape: f32[16,32], index: 0, kind: input, shape index: {}]   ;;  %s191_s1 = inlined_call_operand.hbm [shape: f32[16,32], index: 1, kind: input, shape index: {}]   ;;  %s192_s2 = inlined_call_operand.vmem [shape: f32[16,1], index: 2, kind: output, shape index: {}]  }
   0x1   :  { %8 = vsyncpa [#allocation6], 0  ;;  %s134_s9 = smov [#allocation3]   ;;  %s86_s13 = scalar_lea.hbm %s190_s0, 256 }
   0x2   :  { %s14_s10 = sshll.u32 %s134_s9, 4  ;;  %p87_p0 = scmp.ne.s32.totalorder %s190_s0, %s86_s13  ;;  %s15_s10 = int_to_ptr.vmem [resolvable:$true] %s14_s10 }
   0x3   :  { %p90_p1 = scmp.lt.u32.totalorder %s86_s13, %s190_s0 }
   0x5   :  { %p92_p2 = pnand %p90_p1, %p87_p0 }
   0x7   :  { %95 = shalt.err (!%p92_p2)
}
   0x8   :  { %s96_s18 = scalar_lea.vmem %s15_s10, 256  ;;  %p101_p4 = scmp.lt.s32.totalorder %s15_s10, %s15_s10 }
   0x9   :  { %p97_p3 = scmp.ne.s32.totalorder %s15_s10, %s96_s18  ;;  %p102_p5 = scmp.lt.s32.totalorder %s96_s18, %s96_s18 }
   0xb   :  { %p103_p6 = por %p102_p5, %p101_p4 }
   0xd   :  { %p104_p7 = pnand %p103_p6, %p97_p3 }
   0xf   :  { %107 = shalt.err (!%p104_p7)
}
  0x10   :  { %s135_s19 = smov 128   ;;  %s136_s20 = smov 8  }
  0x11   :  { %20 = dma.hbm_to_vmem [thread:$0]  %s190_s0, 256, %s15_s10, [#allocation4], %s135_s19, %s135_s19, %s136_s20  }
  0x12   :  { %s137_s23 = smov [#allocation5]   ;;  %s108_s27 = scalar_lea.hbm %s191_s1, 256 }
  0x13   :  { %s26_s24 = sshll.u32 %s137_s23, 4  ;;  %p109_p8 = scmp.ne.s32.totalorder %s191_s1, %s108_s27  ;;  %s27_s24 = int_to_ptr.vmem [resolvable:$true] %s26_s24 }
  0x14   :  { %p112_p9 = scmp.lt.u32.totalorder %s108_s27, %s191_s1 }
  0x16   :  { %p114_p10 = pnand %p112_p9, %p109_p8 }
  0x18   :  { %117 = shalt.err (!%p114_p10)
}
  0x19   :  { %s118_s4 = scalar_lea.vmem %s27_s24, 256  ;;  %p123_p12 = scmp.lt.s32.totalorder %s27_s24, %s27_s24 }
  0x1a   :  { %p119_p11 = scmp.ne.s32.totalorder %s27_s24, %s118_s4  ;;  %p124_p13 = scmp.lt.s32.totalorder %s118_s4, %s118_s4 }
  0x1c   :  { %p125_p0 = por %p124_p13, %p123_p12 }
  0x1e   :  { %p126_p1 = pnand %p125_p0, %p119_p11 }
  0x20   :  { %129 = shalt.err (!%p126_p1)
}
  0x21   :  { %32 = dma.hbm_to_vmem [thread:$0]  %s191_s1, 256, %s27_s24, [#allocation6], %s135_s19, %s135_s19, %s136_s20  }
  0x22   :  { %130 = dma.done.wait [#allocation4], 256  }
  0x23   :  { %131 = vsyncadd [#allocation4], 4294967040 }
  0x24   :  { %132 = dma.done.wait [#allocation6], 256  }
  0x25   :  { %133 = vsyncadd [#allocation6], 4294967040  ;;  %vm43_vm0 = vcmask 7168   ;;  %v138_v0 = vmov 0.0   ;;  %v46_v1 = vld [vmem:[#allocation3] sm:$0xff]  ;;  %v48_v2 = vld [vmem:[#allocation5] sm:$0xff] }
  0x26   :  { %44 = vst.msk [vmem:[#allocation2] sm:$0xff] %vm43_vm0, %v138_v0  ;;  %45 = vst.msk [vmem:[#allocation2 + $0x8] sm:$0xff] %vm43_vm0, %v138_v0  ;;  %v47_v3 = vld [vmem:[#allocation3 + $0x8] sm:$0xff]  ;;  %v50_v4 = vsub.f32 %v46_v1, %v48_v2  ;;  %v49_v5 = vld [vmem:[#allocation5 + $0x8] sm:$0xff]  ;;  %vm56_vm1 = vcmask 261120  }
  0x27   :  { %v51_v6 = vsub.f32 %v47_v3, %v49_v5 }
  0x28   :  { %v52_v7 = vand.u32 2147483647, %v50_v4 }
  0x29   :  { %v53_v8 = vand.u32 2147483647, %v51_v6 }
  0x2a   :  { %v57_v9 = vsel %vm56_vm1, %v52_v7, 0.0 }
  0x2b   :  { %58 = vadd.xlane.f32.xlu0 %v57_v9  ;;  %v60_v10 = vsel %vm56_vm1, %v53_v8, 0.0 }
  0x2d   :  { %v54_v11 = vld [vmem:[#allocation2] sm:$0xff]  ;;  %v55_v14 = vld [vmem:[#allocation2 + $0x8] sm:$0xff] }
  0x2f   :  { %61 = vadd.xlane.f32.xlu0 %v60_v10 }
  0xb8   :  { %v59_v12 = vpop.xlane.xlu0 %58 }
  0xb9   :  { %v63_v13 = vadd.f32 %v59_v12, %v54_v11 }
  0xbb   :  { %66 = vst.msk [vmem:[#allocation2] sm:$0xff] %vm43_vm0, %v63_v13 }
  0xbc   :  { %v62_v15 = vpop.xlane.xlu0 %61 }
  0xbd   :  { %v64_v16 = vadd.f32 %v62_v15, %v55_v14 }
  0xbf   :  { %67 = vst.msk [vmem:[#allocation2 + $0x8] sm:$0xff] %vm43_vm0, %v64_v16 }
  0xc2   :  { %v71_v17 = vld [vmem:[#allocation2] sm:$0xff] }
  0xc3   :  { %73 = vst.msk [vmem:[%s192_s2] sm:$0xff] %vm43_vm0, %v71_v17 }
  0xc6   :  { %v72_v18 = vld [vmem:[#allocation2 + $0x8] sm:$0xff] }
  0xc7   :  { %74 = vst.msk [vmem:[%s192_s2 + $0x8] sm:$0xff] %vm43_vm0, %v72_v18 }
  0xc8   :  { %79 = vsyncpa [#allocation4], 1 }
  0xc9   :  { %80 = vsyncpa [#allocation6], 1 }

</bundles_post_ra>
